<compile_context>
chip_gen: v5e
topology: v5e:2x2
jax: 0.10.0
libtpu: 0.0.40
codegen_flags: <defaults>
</compile_context>

<pallas_src>
import functools
import math

import jax
import jax.numpy as jnp
from jax.experimental import pallas as pl
from jax.experimental.pallas import tpu as pltpu


# Largest vocab for which the one-hot MXU gather is used. Above this, the
# (T, V) one-hot operand and the T*V*D MACs stop being competitive with a
# direct row gather from HBM.
_ONEHOT_MAX_VOCAB = 2048


def _round_up(x, m):
    return ((x + m - 1) // m) * m


def _pick_tile(n, max_tile):
    """Largest tile (multiple of 8, <= max_tile); prefer a divisor of n so the
    padded length equals n and the post-call slice can be skipped."""
    max_tile = max(8, (max_tile // 8) * 8)
    if n % 8 == 0:
        for t in range(min(max_tile, n), 7, -8):
            if n % t == 0:
                return t
    return min(max_tile, _round_up(n, 8))


def _vmem_capacity_bytes():
    try:
        return int(pltpu.get_tpu_info().vmem_capacity_bytes)
    except Exception:
        return 64 * 1024 * 1024  # conservative default: v7x physical VMEM


# ---------------------------------------------------------------------------
# Fast path: VMEM-resident table, dense one-hot MXU gather per (T, D) tile.
# ---------------------------------------------------------------------------
def _embed_onehot_kernel(ids_ref, emb_ref, out_ref, *, vocab):
    """out_tile = one_hot(ids_tile, V) @ table.

    ids_ref : (T, 1) int32 VMEM block — token ids for this tile
    emb_ref : (V, D) table block with a constant index_map — fetched once,
              VMEM-resident across all grid steps
    out_ref : (T, D) output tile (dense, unmasked stores for D % 128 == 0)
    """
    ids = ids_ref[...]                                              # (T, 1)
    cols = jax.lax.broadcasted_iota(jnp.int32, (ids.shape[0], vocab), 1)
    onehot = (ids == cols).astype(emb_ref.dtype)                    # (T, V), exact 0/1
    out_ref[...] = jnp.dot(
        onehot, emb_ref[...], preferred_element_type=jnp.float32
    ).astype(out_ref.dtype)


def _embed_onehot(ids, emb_table, lead_shape, tile):
    V, D = emb_table.shape
    dtype = emb_table.dtype
    itemsize = jnp.dtype(dtype).itemsize
    N = ids.shape[0]

    T = _pick_tile(N, tile)
    N_pad = _round_up(N, T)
    if N_pad != N:
        ids = jnp.pad(ids, (0, N_pad - N))          # pad ids only, never the table
    ids2d = ids.reshape(N_pad, 1)

    # VMEM budget: resident table (conservatively 2x: default pipeline keeps
    # two buffers even for a constant index_map), double-buffered out/id tiles,
    # plus in-body one-hot operand and f32 matmul result.
    vmem_needed = (2 * V * D * itemsize + 2 * T * D * itemsize
                   + 2 * T * 4 + T * V * itemsize + T * D * 4)
    cap = _vmem_capacity_bytes()
    vmem_limit = int(min(max(vmem_needed + (16 << 20), 32 << 20), cap - (8 << 20)))

    out_flat = pl.pallas_call(
        functools.partial(_embed_onehot_kernel, vocab=V),
        out_shape=jax.ShapeDtypeStruct((N_pad, D), dtype),
        grid_spec=pltpu.PrefetchScalarGridSpec(
            num_scalar_prefetch=0,
            grid=(N_pad // T,),
            in_specs=[
                pl.BlockSpec((T, 1), lambda i: (i, 0)),    # per-tile ids (VMEM)
                pl.BlockSpec((V, D), lambda i: (0, 0)),    # whole table, resident
            ],
            out_specs=pl.BlockSpec((T, D), lambda i: (i, 0)),
        ),
        compiler_params=pltpu.CompilerParams(
            # Each step writes a disjoint output tile -> parallel axis
            # (split across v7x's two TensorCores; no-op on v5e/v6e).
            dimension_semantics=("parallel",),
            vmem_limit_bytes=vmem_limit,
        ),
    )(ids2d, emb_table)

    out = out_flat if N_pad == N else out_flat[:N]
    return out.reshape(*lead_shape, D)


# ---------------------------------------------------------------------------
# Fallback: table stays in HBM; batched, double-buffered manual row-DMA gather.
# ---------------------------------------------------------------------------
def _embed_dma_gather_kernel(ids_ref, table_ref, out_ref, buf, sems, *, tile):
    """Gather `tile` rows per grid step; prefetch next step's rows.

    ids_ref   : (N_pad,) int32 in SMEM (scalar prefetch)
    table_ref : (V, D) table ref, memory_space=pl.ANY (stays in HBM)
    out_ref   : (tile, D) VMEM output block (dense store)
    buf       : (2, tile, D) VMEM scratch (double buffer)
    sems      : (2, tile) DMA semaphores
    """
    step = pl.program_id(0)
    n_steps = pl.num_programs(0)
    slot = step % 2

    def row_copy(token_idx, slot_idx, j):
        row = ids_ref[token_idx]
        return pltpu.make_async_copy(
            table_ref.at[pl.ds(row, 1), :],
            buf.at[slot_idx, pl.ds(j, 1), :],
            sems.at[slot_idx, j],
        )

    def issue(step_idx, slot_idx):
        base = step_idx * tile
        for j in range(tile):
            row_copy(base + j, slot_idx, j).start()

    # Prime the pipeline with this step's rows on the very first step.
    @pl.when(step == 0)
    def _():
        issue(0, 0)

    # Prefetch the next step's rows into the other slot (kept in flight while
    # this step's rows land and its output tile is written back).
    @pl.when(step + 1 < n_steps)
    def _():
        issue(step + 1, 1 - slot)

    # Wait for this step's rows (descriptor only fixes the expected size).
    for j in range(tile):
        row_copy(0, slot, j).wait()

    out_ref[...] = buf[slot]   # one dense (tile, D) store


def _embed_dma(ids, emb_table, lead_shape, tile):
    V, D = emb_table.shape
    dtype = emb_table.dtype
    N = ids.shape[0]

    G = _pick_tile(N, tile)
    N_pad = _round_up(N, G)
    if N_pad != N:
        ids = jnp.pad(ids, (0, N_pad - N))   # padded ids are 0 -> valid row, sliced off

    # TODO(synk): ids are scalar-prefetched into SMEM (1-D arrays pad to the
    # next power-of-two bytes) — for hundreds of thousands of tokens, chunk the
    # call or feed ids per tile to avoid the SMEM capacity cliff.
    out_flat = pl.pallas_call(
        functools.partial(_embed_dma_gather_kernel, tile=G),
        out_shape=jax.ShapeDtypeStruct((N_pad, D), dtype),
        grid_spec=pltpu.PrefetchScalarGridSpec(
            num_scalar_prefetch=1,
            grid=(N_pad // G,),
            in_specs=[pl.BlockSpec(memory_space=pl.ANY)],     # table stays in HBM
            out_specs=pl.BlockSpec((G, D), lambda i, ids_ref: (i, 0)),
            scratch_shapes=[
                pltpu.VMEM((2, G, D), dtype),
                pltpu.SemaphoreType.DMA((2, G)),
            ],
        ),
        compiler_params=pltpu.CompilerParams(
            # Cross-step DMA prefetch carries state between grid steps, so the
            # token axis must stay sequential ("arbitrary"), not "parallel".
            dimension_semantics=("arbitrary",),
        ),
    )(ids, emb_table)

    out = out_flat if N_pad == N else out_flat[:N]
    return out.reshape(*lead_shape, D)


# ---------------------------------------------------------------------------
# Public wrapper (== InputEmbedding.forward).
# ---------------------------------------------------------------------------
def input_embedding(x, emb_table, *, tile=256, dma_tile=32, method="auto"):
    """Pallas equivalent of torch.nn.Embedding(V, D)(x); x is an integer array."""
    V, D = emb_table.shape
    lead_shape = x.shape
    N = math.prod(lead_shape) if lead_shape else 1
    itemsize = jnp.dtype(emb_table.dtype).itemsize

    # Clamp ids so a bad token id can never become an OOB VMEM read or DMA.
    ids = jnp.clip(x.reshape(N).astype(jnp.int32), 0, V - 1)

    if method == "auto":
        T_probe = _pick_tile(N, tile)
        vmem_needed = (2 * V * D * itemsize + 2 * T_probe * D * itemsize
                       + 2 * T_probe * 4 + T_probe * V * itemsize + T_probe * D * 4)
        fits = vmem_needed <= 0.7 * _vmem_capacity_bytes()
        method = "onehot" if (V <= _ONEHOT_MAX_VOCAB and fits) else "dma"

    if method == "onehot":
        return _embed_onehot(ids, emb_table, lead_shape, tile)
    # TODO(synk): add a VMEM-resident vectorized-take path for medium vocabs
    # (V > 2048 but table still VMEM-resident) so huge-N lookups pay one table
    # fetch instead of N random HBM row DMAs.
    return _embed_dma(ids, emb_table, lead_shape, dma_tile)


if __name__ == "__main__":
    key = jax.random.PRNGKey(0)
    k_emb, k_ids, k_ids2 = jax.random.split(key, 3)

    # InputEmbedding(num_embeddings=32, embedding_dim=128); ids of shape (2, 8).
    num_embeddings, embedding_dim = 32, 128
    B, S = 2, 8

    # N(0,1) init (like nn.Embedding), rounded to bf16-representable values so
    # the one-hot MXU gather is exact regardless of the MXU's f32 pass mode.
    emb_table = (
        jax.random.normal(k_emb, (num_embeddings, embedding_dim), dtype=jnp.float32)
        .astype(jnp.bfloat16).astype(jnp.float32)
    )
    x = jax.random.randint(k_ids, (B, S), 0, num_embeddings, dtype=jnp.int32)
    ref = jnp.take(emb_table, x, axis=0)

    # Fast path (auto-selected for small vocab): one-hot MXU gather.
    out = jax.block_until_ready(input_embedding(x, emb_table))
    assert out.shape == (B, S, embedding_dim)
    assert jnp.allclose(out, ref, rtol=1e-6, atol=1e-6), "one-hot gather mismatch"

    # Fallback path (forced): batched, double-buffered HBM row-DMA gather, on a
    # shape with several grid steps so the cross-step prefetch is exercised.
    B2, S2, V2 = 2, 40, 64
    emb_table2 = jax.random.normal(k_emb, (V2, embedding_dim), dtype=jnp.float32)
    x2 = jax.random.randint(k_ids2, (B2, S2), 0, V2, dtype=jnp.int32)
    ref2 = jnp.take(emb_table2, x2, axis=0)
    out2 = jax.block_until_ready(input_embedding(x2, emb_table2, method="dma"))
    assert out2.shape == (B2, S2, embedding_dim)
    assert jnp.array_equal(out2, ref2), "DMA gather mismatch"

    print("KERNEL_OK")
</pallas_src>

<mosaic_0001>
module attributes {stable_mosaic.version = 11 : i64} {
  func.func @_embed_onehot_kernel(%arg0: i32, %arg1: memref<16x1xi32, #tpu.memory_space<vmem>>, %arg2: memref<32x128xf32, #tpu.memory_space<vmem>>, %arg3: memref<16x128xf32, #tpu.memory_space<vmem>>) attributes {dimension_semantics = [#tpu.dimension_semantics<parallel>], iteration_bounds = array<i64: 1>, scalar_prefetch = 0 : i64, scratch_operands = 0 : i64, tpu.core_type = #tpu.core_type<tc>, window_params = [{transform_indices = @transform_0, window_bounds = array<i64: 16, 1>}, {pipeline_mode = #tpu.pipeline_mode<synchronous>, transform_indices = @transform_1, window_bounds = array<i64: 32, 128>}, {transform_indices = @transform_2, window_bounds = array<i64: 16, 128>}]} {
    %c0 = arith.constant 0 : index
    %c0_0 = arith.constant 0 : index
    %0 = vector.load %arg1[%c0, %c0_0] : memref<16x1xi32, #tpu.memory_space<vmem>>, vector<16x1xi32>
    %1 = tpu.iota {dimensions = array<i32: 1>} : vector<16x32xi32>
    %2 = vector.broadcast %0 : vector<16x1xi32> to vector<16x32xi32>
    %3 = arith.cmpi eq, %2, %1 : vector<16x32xi32>
    %4 = arith.extui %3 : vector<16x32xi1> to vector<16x32xi32>
    %5 = arith.sitofp %4 : vector<16x32xi32> to vector<16x32xf32>
    %c0_1 = arith.constant 0 : index
    %c0_2 = arith.constant 0 : index
    %6 = vector.load %arg2[%c0_1, %c0_2] : memref<32x128xf32, #tpu.memory_space<vmem>>, vector<32x128xf32>
    %cst = arith.constant dense<0.000000e+00> : vector<16x128xf32>
    %7 = tpu.matmul %5, %6, %cst {dimension_numbers = #tpu.dot_dimension_numbers<[1], [0], [0], [1], [0, 0, 1, 1], [], []>} : vector<16x32xf32>, vector<32x128xf32>, vector<16x128xf32> -> vector<16x128xf32>
    %c0_3 = arith.constant 0 : index
    %c0_4 = arith.constant 0 : index
    %8 = vector.load %arg3[%c0_3, %c0_4] : memref<16x128xf32, #tpu.memory_space<vmem>>, vector<16x128xf32>
    tpu.vector_store %arg3[%c0_3, %c0_4], %7 {strides = array<i32>} : memref<16x128xf32, #tpu.memory_space<vmem>>, vector<16x128xf32>,
    return
  }
  func.func @transform_0(%arg0: i32) -> (i32, i32) {
    %c0_i32 = arith.constant 0 : i32
    %c0_i32_0 = arith.constant 0 : i32
    return %arg0, %c0_i32 : i32, i32
  }
  func.func @transform_1(%arg0: i32) -> (i32, i32) {
    %c0_i32 = arith.constant 0 : i32
    %c0_i32_0 = arith.constant 0 : i32
    %c0_i32_1 = arith.constant 0 : i32
    return %c0_i32, %c0_i32_0 : i32, i32
  }
  func.func @transform_2(%arg0: i32) -> (i32, i32) {
    %c0_i32 = arith.constant 0 : i32
    %c0_i32_0 = arith.constant 0 : i32
    return %arg0, %c0_i32 : i32, i32
  }
}

</mosaic_0001>

<bundles_post_ra>
// kernel: tpu_custom_call.1
= control target key start
LH: loop header
LB: loop body
LE: loop exit
PB: predicated region body
PF: predicated region fallthrough
CT: control target
= control target key end

     0   :  { %7 = vsyncpa [#allocation3], 0  ;;  %s205_s0 = inlined_call_operand.vmem [shape: s32[16,1], index: 0, kind: input, shape index: {}]   ;;  %s206_s1 = inlined_call_operand.hbm [shape: f32[32,128], index: 1, kind: input, shape index: {}]   ;;  %s207_s2 = inlined_call_operand.hbm [shape: f32[16,128], index: 2, kind: output, shape index: {}]  }
   0x1   :  { %8 = vsyncpa [#allocation4], 0  ;;  %s15_s11 = sshll.u32 %s206_s1, 4  ;;  %s166_s12 = smov [#allocation2]   ;;  %s16_s11 = int_to_ptr.hbm [resolvable:$true] %s15_s11 }
   0x2   :  { %s17_s13 = sshll.u32 %s166_s12, 4  ;;  %s167_s14 = smov 128   ;;  %s18_s13 = int_to_ptr.vmem [resolvable:$true] %s17_s13 }
   0x3   :  { %s168_s15 = smov 8  }
   0x4   :  { %23 = dma.hbm_to_vmem [thread:$0]  %s16_s11, 512, %s18_s13, [#allocation3], %s167_s14, %s167_s14, %s168_s15  }
   0x5   :  { %162 = dma.done.wait [#allocation3], 512  }
   0x6   :  { %163 = vsyncadd [#allocation3], 4294966784  ;;  %v169_v0 = vmov 0   ;;  %v28_v1 = vld [vmem:[%s205_s0] sm:$0xff]  ;;  %v47_v2 = vld [vmem:[#allocation2 + $0x18] sm:$0xff]  ;;  %v30_v7 = vlaneseq  ;;  %vm48_vm0 = vcmask 261120  }
   0x7   :  { %113 = vset.pattern.permute.xlu0 %v169_v0  ;;  %67 = vmatpush.msra.mxu0 %v47_v2  ;;  %v46_v3 = vld [vmem:[#allocation2 + $0x10] sm:$0xff]  ;;  %v45_v4 = vld [vmem:[#allocation2 + $0x8] sm:$0xff]  ;;  %v44_v6 = vld [vmem:[#allocation2] sm:$0xff]  ;;  %v170_v10 = vmov 0.0   ;;  %s86_s22 = sshll.u32 %s207_s2, 4  ;;  %s87_s22 = int_to_ptr.hbm [resolvable:$true] %s86_s22 }
   0x8   :  { %33 = vperm.xlu0 %113, %v28_v1   ;;  %103 = vmatpush.msra.mxu1 %v47_v2  ;;  %v29_v5 = vld [vmem:[%s205_s0 + $0x8] sm:$0xff]  ;;  %v31_v8 = vand.u32 127, %v30_v7  ;;  %s171_s0 = smov [#allocation5]  }
   0x9   :  { %68 = vmatpush.msra.mxu0 %v46_v3  ;;  %s84_s19 = sshll.u32 %s171_s0, 4  ;;  %s85_s19 = int_to_ptr.vmem [resolvable:$true] %s84_s19 }
   0xa   :  { %104 = vmatpush.msra.mxu1 %v46_v3 }
   0xb   :  { %69 = vmatpush.msra.mxu0 %v45_v4 }
   0xc   :  { %105 = vmatpush.msra.mxu1 %v45_v4 }
   0xd   :  { %70 = vmatpush.msra.mxu0 %v44_v6 }
   0xe   :  { %106 = vmatpush.msra.mxu1 %v44_v6 }
  0x10   :  { %36 = vperm.xlu0 %113, %v29_v5  }
  0x7a   :  { %v34_v9 = vpop.permute.xlu0 %33 }
  0x7b   :  { %vm38_vm1 = vcmp.eq.s32.totalorder %v34_v9, %v31_v8 }
  0x7c   :  { %v99_v11 = vsel %vm38_vm1, 1.0, %v170_v10 }
  0x7d   :  { %101 = vmatmul.msk.f32.vlgmr.msra.gmra.mxu0 %vm48_vm0, %v99_v11 }
  0x82   :  { %v37_v12 = vpop.permute.xlu0 %36 }
  0x83   :  { %vm39_vm2 = vcmp.eq.s32.totalorder %v37_v12, %v31_v8 }
  0x84   :  { %v100_v13 = vsel %vm39_vm2, 1.0, %v170_v10 }
  0x85   :  { %102 = vmatmul.msk.f32.vlgmr.msra.gmra.mxu1 %vm48_vm0, %v100_v13 }
  0xfa   :  { %v72_v14 = vpop.f32.mrf.mxu0 }
  0xfb   :  { %78 = vst [vmem:[#allocation5] sm:$0xff] %v72_v14 }
 0x102   :  { %v75_v15 = vpop.f32.mrf.mxu1 }
 0x103   :  { %79 = vst [vmem:[#allocation5 + $0x8] sm:$0xff] %v75_v15 }
 0x104   :  { %92 = dma.vmem_to_hbm [thread:$0]  %s85_s19, 256, %s87_s22, [#allocation4], %s167_s14, %s167_s14, %s168_s15  }
 0x105   :  { %164 = dma.done.wait [#allocation4], 256  }
 0x106   :  { %165 = vsyncadd [#allocation4], 4294967040 }
 0x107   :  { %97 = vsyncpa [#allocation3], 1 }
 0x108   :  { %98 = vsyncpa [#allocation4], 1 }

</bundles_post_ra>
